<compile_context>
chip_gen: v7x
topology: tpu7x:2x2x1
jax: 0.10.0
libtpu: 0.0.40
codegen_flags: <defaults>
</compile_context>

<pallas_src>
import functools
import numpy as np
import jax
import jax.numpy as jnp
from jax.experimental import pallas as pl
from jax.experimental.pallas import tpu as pltpu


def _round_up(x, m):
    return (x + m - 1) // m * m


def _conv1x1_kernel(w_ref, b_ref, x_ref, o_ref, *, sig_end, exp_start, apply_nonlin):
    # w_ref: (Cout_pad, Cin)   b_ref: (Cout_pad, 1)
    # x_ref: (Cin, tp)         o_ref: (Cout_pad, tp)
    y = jnp.dot(w_ref[...], x_ref[...], preferred_element_type=jnp.float32)
    y = y + b_ref[...]

    if not apply_nonlin:
        o_ref[...] = y.astype(o_ref.dtype)
        return

    cout_pad = o_ref.shape[0]
    if sig_end % 8 == 0 and exp_start % 8 == 0:
        # Static channel-group slices: sigmoid / identity / exp each touch only
        # their own sublane range (cuts EUP traffic vs. full-tile where-select).
        if sig_end > 0:
            o_ref[:sig_end, :] = jax.nn.sigmoid(y[:sig_end, :]).astype(o_ref.dtype)
        if exp_start > sig_end:
            o_ref[sig_end:exp_start, :] = y[sig_end:exp_start, :].astype(o_ref.dtype)
        if cout_pad > exp_start:
            # exp also covers the zero-padded tail channels: exp(0)=1, sliced off later.
            o_ref[exp_start:, :] = jnp.exp(y[exp_start:, :]).astype(o_ref.dtype)
    else:
        # Fallback (boundaries not sublane-aligned): masked select along sublanes.
        ch = jax.lax.broadcasted_iota(jnp.int32, y.shape, 0)
        y = jnp.where(ch < sig_end, jax.nn.sigmoid(y), y)
        y = jnp.where(ch >= exp_start, jnp.exp(y), y)
        o_ref[...] = y.astype(o_ref.dtype)


def _choose_pixel_tile(hw, cin, cout_pad, budget_bytes=16 << 20):
    """Pick pixel-tile width (lane dim) and padded pixel count.

    Prefers large tiles (up to 1024) that divide the 128-padded H*W exactly, while
    keeping double-buffered (in + out) f32 tiles within `budget_bytes` so the same
    choice is safe on v5e (16 MiB default scoped VMEM) and v7x (64 MiB physical).
    """
    bytes_per_pixel = 2 * 4 * (cin + cout_pad)  # double-buffered in + out, f32
    hw_pad = _round_up(hw, 128)
    fit = max(128, (budget_bytes // bytes_per_pixel) // 128 * 128)
    max_t = min(1024, hw_pad, fit)
    for t in range(max_t, 127, -128):
        if hw_pad % t == 0:
            return t, hw_pad
    return 128, hw_pad


def conv1x1_channel_major(x_flat, w_pad, b_pad, *, sig_end, exp_start, apply_nonlin, tp):
    """x_flat: (N, Cin, HWpad) f32, w_pad: (Cout_pad, Cin), b_pad: (Cout_pad, 1).

    Returns (N, Cout_pad, HWpad) f32 with the eval-mode nonlinearities fused.
    """
    n, cin, hw_pad = x_flat.shape
    cout_pad = w_pad.shape[0]
    assert hw_pad % tp == 0

    kernel = functools.partial(
        _conv1x1_kernel, sig_end=sig_end, exp_start=exp_start, apply_nonlin=apply_nonlin
    )

    # VMEM budget: double-buffered pixel tiles + (worst case double-buffered) params.
    tile_bytes = 2 * 4 * tp * (cin + cout_pad)
    param_bytes = 2 * 4 * (cout_pad * cin + cout_pad)
    vmem_limit = int(min(max(tile_bytes + param_bytes + (8 << 20), 16 << 20), 56 << 20))

    def run(single_buffer_params):
        # Weight/bias have a constant index_map; single-buffering them saves VMEM.
        wb = {"pipeline_mode": pl.Buffered(1)} if single_buffer_params else {}
        grid_spec = pltpu.PrefetchScalarGridSpec(
            num_scalar_prefetch=0,
            grid=(n, hw_pad // tp),
            in_specs=[
                pl.BlockSpec((cout_pad, cin), lambda b, p: (0, 0), **wb),   # weight (resident)
                pl.BlockSpec((cout_pad, 1), lambda b, p: (0, 0), **wb),     # bias   (resident)
                pl.BlockSpec((None, cin, tp), lambda b, p: (b, 0, p)),      # pixel tile
            ],
            out_specs=pl.BlockSpec((None, cout_pad, tp), lambda b, p: (b, 0, p)),
        )
        return pl.pallas_call(
            kernel,
            out_shape=jax.ShapeDtypeStruct((n, cout_pad, hw_pad), jnp.float32),
            grid_spec=grid_spec,
            compiler_params=pltpu.CompilerParams(
                dimension_semantics=("parallel", "parallel"),
                vmem_limit_bytes=vmem_limit,
            ),
        )(w_pad, b_pad, x_flat)

    try:
        return run(True)
    except Exception:
        # Older/newer jax without BlockSpec pipeline_mode support: default buffering.
        return run(False)


def pixel_shuffle_nchw(x, r=2):
    n, c, h, w = x.shape
    x = x.reshape(n, c // (r * r), r, r, h, w)
    x = x.transpose(0, 1, 4, 2, 5, 3)
    return x.reshape(n, c // (r * r), h * r, w * r)


class CompositeFieldFusedPallas:
    """JAX/Pallas re-implementation of openpifpaf CompositeFieldFused."""

    dropout_p = 0.0   # Dropout2d(p=0.0) is the identity
    quad = 1          # one PixelShuffle(2) + [:-1, :-1] crop

    def __init__(self, *, n_fields, n_confidences, n_vectors, n_scales,
                 in_features, key):
        self.n_fields = n_fields
        self.n_confidences = n_confidences
        self.n_vectors = n_vectors
        self.n_scales = n_scales
        self.in_features = in_features

        feature_groups = [
            n_confidences * n_fields,
            n_vectors * 2 * n_fields,
            n_vectors * 1 * n_fields,
            n_scales * n_fields,
        ]
        self.out_features = []
        for fg in feature_groups:
            self.out_features.append(
                (self.out_features[-1] if self.out_features else 0) + fg
            )

        cout = self.out_features[-1] * 4 ** self.quad
        self.cout = cout
        self.cout_pad = _round_up(cout, 128)   # lane/sublane-friendly padded channels

        kw, kb = jax.random.split(key)
        scale = 1.0 / np.sqrt(in_features)     # matches torch Conv2d default init range
        # Conv2d(in_features, cout, kernel_size=1) -> weight (cout, in_features)
        self.weight = jax.random.uniform(kw, (cout, in_features), jnp.float32, -scale, scale)
        self.bias = jax.random.uniform(kb, (cout,), jnp.float32, -scale, scale)

        pad = self.cout_pad - cout
        self.weight_pad = jnp.pad(self.weight, ((0, pad), (0, 0)))      # (Cout_pad, Cin)
        self.bias_pad = jnp.pad(self.bias, (0, pad))[:, None]           # (Cout_pad, 1)

    def __call__(self, x_nchw, training=False):
        n, cin, h, w = x_nchw.shape
        assert cin == self.in_features
        hw = h * w

        # NCHW -> (N, Cin, H*W) is a pure reshape (no transpose pass).
        x_flat = x_nchw.reshape(n, cin, hw)
        tp, hw_pad = _choose_pixel_tile(hw, cin, self.cout_pad)
        if hw_pad != hw:
            x_flat = jnp.pad(x_flat, ((0, 0), (0, 0), (0, hw_pad - hw)))

        # Conv output channel oc maps to PixelShuffle(2) channel oc // 4, so the
        # nonlinearity boundaries in conv-channel space are 4x the fused ones.
        sig_end = self.out_features[0] * 4
        exp_start = self.out_features[2] * 4

        y = conv1x1_channel_major(
            x_flat, self.weight_pad, self.bias_pad,
            sig_end=sig_end, exp_start=exp_start,
            apply_nonlin=not training, tp=tp,
        )                                               # (N, Cout_pad, HWpad)
        if hw_pad != hw:
            y = y[:, :, :hw]
        y = y.reshape(n, self.cout_pad, h, w)           # NCHW, padded channels at tail

        # PixelShuffle(2) + crop last row/col.  Padded channels stay at the channel
        # tail and are simply never selected by the group slices below.
        for _ in range(self.quad):
            y = pixel_shuffle_nchw(y, 2)[:, :, :-1, :-1]

        hp, wp = y.shape[2], y.shape[3]
        o0, o1, o2, o3 = self.out_features

        classes_x = y[:, 0:o0].reshape(n, self.n_fields, self.n_confidences, hp, wp)
        regs_x = y[:, o0:o1].reshape(n, self.n_fields, self.n_vectors, 2, hp, wp)
        regs_logb = y[:, o1:o2].reshape(n, self.n_fields, self.n_vectors, hp, wp)
        scales_x = y[:, o2:o3].reshape(n, self.n_fields, self.n_scales, hp, wp)
        return classes_x, regs_x, regs_logb, scales_x


def _reference_forward(module, x_nchw, training=False):
    """Pure-jnp reference of the same forward (for verification)."""
    n, c, h, w = x_nchw.shape
    x_flat = jnp.transpose(x_nchw, (0, 2, 3, 1)).reshape(n * h * w, c)
    y = x_flat @ module.weight.T + module.bias
    if not training:
        col = jnp.arange(y.shape[1])
        y = jnp.where(col < module.out_features[0] * 4, jax.nn.sigmoid(y), y)
        y = jnp.where(col >= module.out_features[2] * 4, jnp.exp(y), y)
    cout = module.weight.shape[0]
    y = y.reshape(n, h, w, cout).transpose(0, 3, 1, 2)
    for _ in range(module.quad):
        y = pixel_shuffle_nchw(y, 2)[:, :, :-1, :-1]
    hp, wp = y.shape[2], y.shape[3]
    o0, o1, o2, o3 = module.out_features
    return (
        y[:, 0:o0].reshape(n, module.n_fields, module.n_confidences, hp, wp),
        y[:, o0:o1].reshape(n, module.n_fields, module.n_vectors, 2, hp, wp),
        y[:, o1:o2].reshape(n, module.n_fields, module.n_vectors, hp, wp),
        y[:, o2:o3].reshape(n, module.n_fields, module.n_scales, hp, wp),
    )


if __name__ == "__main__":
    key = jax.random.PRNGKey(0)
    k_x, k_params = jax.random.split(key)

    # IntensityMeta-like config: 4 keypoints, 1 confidence, 1 vector, 1 scale.
    batch, in_features, H, W = 2, 32, 16, 16
    module = CompositeFieldFusedPallas(
        n_fields=4, n_confidences=1, n_vectors=1, n_scales=1,
        in_features=in_features, key=k_params,
    )

    x = jax.random.normal(k_x, (batch, in_features, H, W), jnp.float32)  # NCHW

    outs = module(x, training=False)
    outs = jax.block_until_ready(outs)

    # Verify against the pure-jnp reference.
    refs = _reference_forward(module, x, training=False)
    for o, r in zip(outs, refs):
        assert o.shape == r.shape, (o.shape, r.shape)
        np.testing.assert_allclose(np.asarray(o), np.asarray(r), rtol=1e-5, atol=1e-5)

    # Expected shapes (H'=W'=2*16-1=31):
    assert outs[0].shape == (2, 4, 1, 31, 31)
    assert outs[1].shape == (2, 4, 1, 2, 31, 31)
    assert outs[2].shape == (2, 4, 1, 31, 31)
    assert outs[3].shape == (2, 4, 1, 31, 31)

    print("KERNEL_OK")
</pallas_src>

<mosaic_0001>
module attributes {stable_mosaic.version = 11 : i64} {
  func.func @_conv1x1_kernel(%arg0: i32, %arg1: i32, %arg2: memref<128x32xf32, #tpu.memory_space<vmem>>, %arg3: memref<128x1xf32, #tpu.memory_space<vmem>>, %arg4: memref<1x32x256xf32, #tpu.memory_space<vmem>>, %arg5: memref<1x128x256xf32, #tpu.memory_space<vmem>>) attributes {dimension_semantics = [#tpu.dimension_semantics<parallel>, #tpu.dimension_semantics<parallel>], iteration_bounds = array<i64: 2, 1>, scalar_prefetch = 0 : i64, scratch_operands = 0 : i64, tpu.core_type = #tpu.core_type<tc>, window_params = [{pipeline_mode = #tpu.pipeline_mode<synchronous>, transform_indices = @transform_0, window_bounds = array<i64: 128, 32>}, {pipeline_mode = #tpu.pipeline_mode<synchronous>, transform_indices = @transform_1, window_bounds = array<i64: 128, 1>}, {transform_indices = @transform_2, window_bounds = array<i64: 1, 32, 256>}, {transform_indices = @transform_3, window_bounds = array<i64: 1, 128, 256>}]} {
    %c0 = arith.constant 0 : index
    %c0_0 = arith.constant 0 : index
    %0 = vector.load %arg2[%c0, %c0_0] : memref<128x32xf32, #tpu.memory_space<vmem>>, vector<128x32xf32>
    %c0_1 = arith.constant 0 : index
    %c0_2 = arith.constant 0 : index
    %c0_3 = arith.constant 0 : index
    %1 = vector.load %arg4[%c0_1, %c0_2, %c0_3] : memref<1x32x256xf32, #tpu.memory_space<vmem>>, vector<1x32x256xf32>
    %2 = vector.shape_cast %1 : vector<1x32x256xf32> to vector<32x256xf32>
    %cst = arith.constant dense<0.000000e+00> : vector<128x256xf32>
    %3 = tpu.matmul %0, %2, %cst {dimension_numbers = #tpu.dot_dimension_numbers<[1], [0], [0], [1], [0, 0, 1, 1], [], []>} : vector<128x32xf32>, vector<32x256xf32>, vector<128x256xf32> -> vector<128x256xf32>
    %c0_4 = arith.constant 0 : index
    %c0_5 = arith.constant 0 : index
    %4 = vector.load %arg3[%c0_4, %c0_5] : memref<128x1xf32, #tpu.memory_space<vmem>>, vector<128x1xf32>
    %5 = vector.broadcast %4 : vector<128x1xf32> to vector<128x256xf32>
    %6 = arith.addf %3, %5 : vector<128x256xf32>
    %7 = vector.extract_strided_slice %6 {offsets = [0, 0], sizes = [16, 256], strides = [1, 1]} : vector<128x256xf32> to vector<16x256xf32>
    %8 = arith.negf %7 : vector<16x256xf32>
    %9 = math.exp %8 : vector<16x256xf32>
    %cst_6 = arith.constant 1.000000e+00 : f32
    %10 = vector.broadcast %cst_6 : f32 to vector<16x256xf32>
    %11 = arith.addf %10, %9 : vector<16x256xf32>
    %12 = arith.divf %10, %11 : vector<16x256xf32>
    %c0_7 = arith.constant 0 : index
    %c0_8 = arith.constant 0 : index
    %c0_9 = arith.constant 0 : index
    %13 = vector.load %arg5[%c0_7, %c0_8, %c0_9] : memref<1x128x256xf32, #tpu.memory_space<vmem>>, vector<1x16x256xf32>
    %14 = vector.shape_cast %13 : vector<1x16x256xf32> to vector<16x256xf32>
    %15 = vector.shape_cast %12 : vector<16x256xf32> to vector<1x16x256xf32>
    tpu.vector_store %arg5[%c0_7, %c0_8, %c0_9], %15 {strides = array<i32>} : memref<1x128x256xf32, #tpu.memory_space<vmem>>, vector<1x16x256xf32>,
    %16 = vector.extract_strided_slice %6 {offsets = [16, 0], sizes = [48, 256], strides = [1, 1]} : vector<128x256xf32> to vector<48x256xf32>
    %c0_10 = arith.constant 0 : index
    %c16 = arith.constant 16 : index
    %c0_11 = arith.constant 0 : index
    %17 = vector.load %arg5[%c0_10, %c16, %c0_11] : memref<1x128x256xf32, #tpu.memory_space<vmem>>, vector<1x48x256xf32>
    %18 = vector.shape_cast %17 : vector<1x48x256xf32> to vector<48x256xf32>
    %19 = vector.shape_cast %16 : vector<48x256xf32> to vector<1x48x256xf32>
    tpu.vector_store %arg5[%c0_10, %c16, %c0_11], %19 {strides = array<i32>} : memref<1x128x256xf32, #tpu.memory_space<vmem>>, vector<1x48x256xf32>,
    %20 = vector.extract_strided_slice %6 {offsets = [64, 0], sizes = [64, 256], strides = [1, 1]} : vector<128x256xf32> to vector<64x256xf32>
    %21 = math.exp %20 : vector<64x256xf32>
    %c0_12 = arith.constant 0 : index
    %c64 = arith.constant 64 : index
    %c0_13 = arith.constant 0 : index
    %22 = vector.load %arg5[%c0_12, %c64, %c0_13] : memref<1x128x256xf32, #tpu.memory_space<vmem>>, vector<1x64x256xf32>
    %23 = vector.shape_cast %22 : vector<1x64x256xf32> to vector<64x256xf32>
    %24 = vector.shape_cast %21 : vector<64x256xf32> to vector<1x64x256xf32>
    tpu.vector_store %arg5[%c0_12, %c64, %c0_13], %24 {strides = array<i32>} : memref<1x128x256xf32, #tpu.memory_space<vmem>>, vector<1x64x256xf32>,
    return
  }
  func.func @transform_0(%arg0: i32, %arg1: i32) -> (i32, i32) {
    %c0_i32 = arith.constant 0 : i32
    %c0_i32_0 = arith.constant 0 : i32
    %c0_i32_1 = arith.constant 0 : i32
    return %c0_i32, %c0_i32_0 : i32, i32
  }
  func.func @transform_1(%arg0: i32, %arg1: i32) -> (i32, i32) {
    %c0_i32 = arith.constant 0 : i32
    %c0_i32_0 = arith.constant 0 : i32
    %c0_i32_1 = arith.constant 0 : i32
    return %c0_i32, %c0_i32_0 : i32, i32
  }
  func.func @transform_2(%arg0: i32, %arg1: i32) -> (i32, i32, i32) {
    %c0_i32 = arith.constant 0 : i32
    %c0_i32_0 = arith.constant 0 : i32
    return %arg0, %c0_i32, %arg1 : i32, i32, i32
  }
  func.func @transform_3(%arg0: i32, %arg1: i32) -> (i32, i32, i32) {
    %c0_i32 = arith.constant 0 : i32
    %c0_i32_0 = arith.constant 0 : i32
    return %arg0, %c0_i32, %arg1 : i32, i32, i32
  }
}

module attributes {stable_mosaic.version = 11 : i64} {
  func.func @_conv1x1_kernel(%arg0: i32, %arg1: i32, %arg2: memref<128x32xf32, #tpu.memory_space<vmem>>, %arg3: memref<128x1xf32, #tpu.memory_space<vmem>>, %arg4: memref<1x32x256xf32, #tpu.memory_space<vmem>>, %arg5: memref<1x128x256xf32, #tpu.memory_space<vmem>>) attributes {dimension_semantics = [#tpu.dimension_semantics<parallel>, #tpu.dimension_semantics<parallel>], iteration_bounds = array<i64: 2, 1>, scalar_prefetch = 0 : i64, scratch_operands = 0 : i64, tpu.core_type = #tpu.core_type<tc>, window_params = [{pipeline_mode = #tpu.pipeline_mode<synchronous>, transform_indices = @transform_0, window_bounds = array<i64: 128, 32>}, {pipeline_mode = #tpu.pipeline_mode<synchronous>, transform_indices = @transform_1, window_bounds = array<i64: 128, 1>}, {transform_indices = @transform_2, window_bounds = array<i64: 1, 32, 256>}, {transform_indices = @transform_3, window_bounds = array<i64: 1, 128, 256>}]} {
    %c0 = arith.constant 0 : index
    %c0_0 = arith.constant 0 : index
    %0 = vector.load %arg2[%c0, %c0_0] : memref<128x32xf32, #tpu.memory_space<vmem>>, vector<128x32xf32>
    %c0_1 = arith.constant 0 : index
    %c0_2 = arith.constant 0 : index
    %c0_3 = arith.constant 0 : index
    %1 = vector.load %arg4[%c0_1, %c0_2, %c0_3] : memref<1x32x256xf32, #tpu.memory_space<vmem>>, vector<1x32x256xf32>
    %2 = vector.shape_cast %1 : vector<1x32x256xf32> to vector<32x256xf32>
    %cst = arith.constant dense<0.000000e+00> : vector<128x256xf32>
    %3 = tpu.matmul %0, %2, %cst {dimension_numbers = #tpu.dot_dimension_numbers<[1], [0], [0], [1], [0, 0, 1, 1], [], []>} : vector<128x32xf32>, vector<32x256xf32>, vector<128x256xf32> -> vector<128x256xf32>
    %c0_4 = arith.constant 0 : index
    %c0_5 = arith.constant 0 : index
    %4 = vector.load %arg3[%c0_4, %c0_5] : memref<128x1xf32, #tpu.memory_space<vmem>>, vector<128x1xf32>
    %5 = vector.broadcast %4 : vector<128x1xf32> to vector<128x256xf32>
    %6 = arith.addf %3, %5 : vector<128x256xf32>
    %7 = vector.extract_strided_slice %6 {offsets = [0, 0], sizes = [16, 256], strides = [1, 1]} : vector<128x256xf32> to vector<16x256xf32>
    %8 = arith.negf %7 : vector<16x256xf32>
    %9 = math.exp %8 : vector<16x256xf32>
    %cst_6 = arith.constant 1.000000e+00 : f32
    %10 = vector.broadcast %cst_6 : f32 to vector<16x256xf32>
    %11 = arith.addf %10, %9 : vector<16x256xf32>
    %12 = arith.divf %10, %11 : vector<16x256xf32>
    %c0_7 = arith.constant 0 : index
    %c0_8 = arith.constant 0 : index
    %c0_9 = arith.constant 0 : index
    %13 = vector.load %arg5[%c0_7, %c0_8, %c0_9] : memref<1x128x256xf32, #tpu.memory_space<vmem>>, vector<1x16x256xf32>
    %14 = vector.shape_cast %13 : vector<1x16x256xf32> to vector<16x256xf32>
    %15 = vector.shape_cast %12 : vector<16x256xf32> to vector<1x16x256xf32>
    tpu.vector_store %arg5[%c0_7, %c0_8, %c0_9], %15 {strides = array<i32>} : memref<1x128x256xf32, #tpu.memory_space<vmem>>, vector<1x16x256xf32>,
    %16 = vector.extract_strided_slice %6 {offsets = [16, 0], sizes = [48, 256], strides = [1, 1]} : vector<128x256xf32> to vector<48x256xf32>
    %c0_10 = arith.constant 0 : index
    %c16 = arith.constant 16 : index
    %c0_11 = arith.constant 0 : index
    %17 = vector.load %arg5[%c0_10, %c16, %c0_11] : memref<1x128x256xf32, #tpu.memory_space<vmem>>, vector<1x48x256xf32>
    %18 = vector.shape_cast %17 : vector<1x48x256xf32> to vector<48x256xf32>
    %19 = vector.shape_cast %16 : vector<48x256xf32> to vector<1x48x256xf32>
    tpu.vector_store %arg5[%c0_10, %c16, %c0_11], %19 {strides = array<i32>} : memref<1x128x256xf32, #tpu.memory_space<vmem>>, vector<1x48x256xf32>,
    %20 = vector.extract_strided_slice %6 {offsets = [64, 0], sizes = [64, 256], strides = [1, 1]} : vector<128x256xf32> to vector<64x256xf32>
    %21 = math.exp %20 : vector<64x256xf32>
    %c0_12 = arith.constant 0 : index
    %c64 = arith.constant 64 : index
    %c0_13 = arith.constant 0 : index
    %22 = vector.load %arg5[%c0_12, %c64, %c0_13] : memref<1x128x256xf32, #tpu.memory_space<vmem>>, vector<1x64x256xf32>
    %23 = vector.shape_cast %22 : vector<1x64x256xf32> to vector<64x256xf32>
    %24 = vector.shape_cast %21 : vector<64x256xf32> to vector<1x64x256xf32>
    tpu.vector_store %arg5[%c0_12, %c64, %c0_13], %24 {strides = array<i32>} : memref<1x128x256xf32, #tpu.memory_space<vmem>>, vector<1x64x256xf32>,
    return
  }
  func.func @transform_0(%arg0: i32, %arg1: i32) -> (i32, i32) {
    %c0_i32 = arith.constant 0 : i32
    %c0_i32_0 = arith.constant 0 : i32
    %c0_i32_1 = arith.constant 0 : i32
    return %c0_i32, %c0_i32_0 : i32, i32
  }
  func.func @transform_1(%arg0: i32, %arg1: i32) -> (i32, i32) {
    %c0_i32 = arith.constant 0 : i32
    %c0_i32_0 = arith.constant 0 : i32
    %c0_i32_1 = arith.constant 0 : i32
    return %c0_i32, %c0_i32_0 : i32, i32
  }
  func.func @transform_2(%arg0: i32, %arg1: i32) -> (i32, i32, i32) {
    %c0_i32 = arith.constant 0 : i32
    %c0_i32_0 = arith.constant 0 : i32
    return %arg0, %c0_i32, %arg1 : i32, i32, i32
  }
  func.func @transform_3(%arg0: i32, %arg1: i32) -> (i32, i32, i32) {
    %c0_i32 = arith.constant 0 : i32
    %c0_i32_0 = arith.constant 0 : i32
    return %arg0, %c0_i32, %arg1 : i32, i32, i32
  }
}

</mosaic_0001>

<bundles_post_ra>
// kernel: tpu_custom_call.1
= control target key start
LH: loop header
LB: loop body
LE: loop exit
PB: predicated region body
PF: predicated region fallthrough
CT: control target
= control target key end

     0   :  { %8 = vsyncpa [#allocation3], 0  ;;  %s1279_s0 = inlined_call_operand.vmem [shape: f32[128,32], index: 0, kind: input, shape index: {}]   ;;  %s1280_s1 = inlined_call_operand.vmem [shape: f32[128,1], index: 1, kind: input, shape index: {}]   ;;  %s1281_s2 = inlined_call_operand.vmem [shape: f32[2,32,256], index: 2, kind: input, shape index: {}]   ;;  %s1282_s3 = inlined_call_operand.hbm [shape: f32[2,128,256], index: 3, kind: output, shape index: {}]  }
   0x1   :  { %10 = vsyncpa [#allocation3 + $0x1], 0  ;;  %s974_s12 = smov 0   ;;  %s976_s13 = smov 0  }
   0x2   :  { %s978_s14 = smov 0   ;;  %s980_s15 = smov 0  }
   0x3   :  { %s982_s16 = smov 0   ;;  %s984_s17 = smov 0  }
   0x4 LB: > { %s713_s18 = sadd.s32 4294967295, %s947_s17   ;;  %s714_s19 = sadd.s32 4294967294, %s947_s17   ;;  %s947_s17 = sphi %s984_s17, %s16_s17   ;;  %s943_s16 = sphi %s982_s16, %s1289_s16   ;;  %s939_s15 = sphi %s980_s15, %s1288_s15   ;;  %s935_s14 = sphi %s978_s14, %s1287_s14   ;;  %s931_s13 = sphi %s976_s13, %s1286_s13   ;;  %s927_s12 = sphi %s974_s12, %s1285_s12  }
   0x5   : > { %s28_s20 = sadd.s32 1, %s943_s16  ;;  %s107_s21 = sadd.s32 1, %s935_s14 }
   0x6   : > { %p30_p0 = scmp.ge.s32.totalorder %s28_s20, 2  ;;  %p117_p1 = scmp.ne.s32.totalorder %s935_s14, %s931_s13 }
   0x7   : > { %p118_p2 = scmp.eq.s32.totalorder %s713_s18, 1  ;;  %p123_p3 = scmp.ne.s32.totalorder %s931_s13, %s927_s12 }
   0x8   : > { %s1291_s20 = smov (%p30_p0, %s28_s20), 0  ;;  %p124_p5 = scmp.eq.s32.totalorder %s714_s19, 1 }
   0x9   : > { %p1014_p4 = por %p118_p2, %p117_p1  ;;  %s102_s23 = ssub.s32 %s943_s16, %s1291_s20 }
   0xa   : > { %p717_p6 = scmp.ge.s32.totalorder %s947_s17, 1  ;;  %p105_p7 = scmp.eq.s32.totalorder %s102_s23, 0 }
   0xb   : > { %p1021_p8 = por %p124_p5, %p123_p3  ;;  %p161_p9 = scmp.lt.s32.totalorder %s947_s17, 3 }
   0xc   : > { %s1027_s25 = scalar_select %p105_p7, %s935_s14, %s107_s21  }
   0xd   : > { %p162_p10 = pnand %p717_p6, %p161_p9 }
   0xe   : > { %p190_p11 = scmp.lt.s32.totalorder (!%p162_p10), %s939_s15, 1  ;;  %v949_v0 = vmov (!%p162_p10), 0.0   ;;  %v950_v1 = vmov (!%p162_p10), 0   ;;  %v224_v2 = vld [vmem:[%s1280_s1] sm:$0xff] (!%p162_p10)  ;;  %v225_v15 = vld [vmem:[%s1280_s1 + $0x8] sm:$0xff] (!%p162_p10)  ;;  %v234_v18 = vld [vmem:[%s1280_s1 + $0x50] sm:$0xff] (!%p162_p10) }
   0xf   : > { %165 = sbr.rel (%p162_p10) target bundleno = 309 (0x135), region = 32  ;;  %433 = vmatprep.mubr.f32.mxu0 (!%p162_p10), %v949_v0  ;;  %481 = vmatprep.mubr.f32.mxu1 (!%p162_p10), %v949_v0  ;;  %v232_v3 = vld [vmem:[%s1280_s1 + $0x40] sm:$0xff] (!%p162_p10)  ;;  %v233_v16 = vld [vmem:[%s1280_s1 + $0x48] sm:$0xff] (!%p162_p10)  ;;  %v235_v19 = vld [vmem:[%s1280_s1 + $0x58] sm:$0xff] (!%p162_p10)  ;;  %vm320_vm0 = vcmask (!%p162_p10), 261120   ;;  %s951_s9 = smov (!%p162_p10), [#allocation2]  }
  0x10   : > { %819 = vset.pattern.permute.xlu0 (!%p162_p10), %v950_v1  ;;  %820 = vset.pattern.permute.xlu1 (!%p162_p10), %v950_v1  ;;  %v200_v20 = vld [vmem:[%s1279_s0] sm:$0xff] (!%p162_p10)  ;;  %v237_v23 = vld [vmem:[%s1280_s1 + $0x68] sm:$0xff] (!%p162_p10)  ;;  %v238_v26 = vld [vmem:[%s1280_s1 + $0x70] sm:$0xff] (!%p162_p10)  ;;  %s873_s10 = sshll.u32 (!%p162_p10), %s951_s9, 4  ;;  %s874_s10 = int_to_ptr.vmem [resolvable:$false] %s873_s10 }
  0x11   : > { %242 = vperm.xlu0 (!%p162_p10), %819, %v224_v2   ;;  %282 = vperm.xlu1 (!%p162_p10), %820, %v232_v3   ;;  %v208_v21 = vld [vmem:[%s1279_s0 + $0x40] sm:$0xff] (!%p162_p10)  ;;  %v201_v24 = vld [vmem:[%s1279_s0 + $0x8] sm:$0xff] (!%p162_p10)  ;;  %v239_v27 = vld [vmem:[%s1280_s1 + $0x78] sm:$0xff] (!%p162_p10)  ;;  %s875_s11 = scalar_lea.vmem (!%p162_p10), %s874_s10, 8192 }
  0x12   : > { %v236_v22 = vld [vmem:[%s1280_s1 + $0x60] sm:$0xff] (!%p162_p10)  ;;  %v209_v25 = vld [vmem:[%s1279_s0 + $0x48] sm:$0xff] (!%p162_p10)  ;;  %v202_v28 = vld [vmem:[%s1279_s0 + $0x10] sm:$0xff] (!%p162_p10) }
  0x13   : > { %v210_v29 = vld [vmem:[%s1279_s0 + $0x50] sm:$0xff] (!%p162_p10)  ;;  %v227_v31 = vld [vmem:[%s1280_s1 + $0x18] sm:$0xff] (!%p162_p10)  ;;  %v228_v34 = vld [vmem:[%s1280_s1 + $0x20] sm:$0xff] (!%p162_p10) }
  0x14   : > { %v226_v30 = vld [vmem:[%s1280_s1 + $0x10] sm:$0xff] (!%p162_p10)  ;;  %v203_v32 = vld [vmem:[%s1279_s0 + $0x18] sm:$0xff] (!%p162_p10)  ;;  %v229_v35 = vld [vmem:[%s1280_s1 + $0x28] sm:$0xff] (!%p162_p10) }
  0x15   : > { %247 = vperm.xlu0 (!%p162_p10), %819, %v225_v15   ;;  %287 = vperm.xlu1 (!%p162_p10), %820, %v233_v16   ;;  %v211_v33 = vld [vmem:[%s1279_s0 + $0x58] sm:$0xff] (!%p162_p10)  ;;  %v204_v36 = vld [vmem:[%s1279_s0 + $0x20] sm:$0xff] (!%p162_p10)  ;;  %v230_v38 = vld [vmem:[%s1280_s1 + $0x30] sm:$0xff] (!%p162_p10) }
  0x16   : > { %s191_s26 = scalar_select %p190_p11, %s939_s15, 1  ;;  %v212_v37 = vld [vmem:[%s1279_s0 + $0x60] sm:$0xff]  ;;  %v231_v39 = vld [vmem:[%s1280_s1 + $0x38] sm:$0xff]  ;;  %v205_v40 = vld [vmem:[%s1279_s0 + $0x28] sm:$0xff] }
  0x17   : > { %v213_v41 = vld [vmem:[%s1279_s0 + $0x68] sm:$0xff]  ;;  %v206_v42 = vld [vmem:[%s1279_s0 + $0x30] sm:$0xff]  ;;  %v207_v44 = vld [vmem:[%s1279_s0 + $0x38] sm:$0xff] }
  0x18   : > { %s746_s27 = sshll.u32 %s191_s26, 6  ;;  %v214_v43 = vld [vmem:[%s1279_s0 + $0x70] sm:$0xff]  ;;  %v215_v45 = vld [vmem:[%s1279_s0 + $0x78] sm:$0xff] }
  0x19   : > { %s197_s30 = scalar_lea.vmem %s1281_s2, %s746_s27  ;;  %292 = vperm.xlu0 %819, %v234_v18   ;;  %297 = vperm.xlu1 %820, %v235_v19   ;;  %s186_s27 = sand.u32 1, %s931_s13  }
  0x1a   : > { %v217_v4 = vld [vmem:[%s197_s30 + $0x8] sm:$0xff]  ;;  %v219_v5 = vld [vmem:[%s197_s30 + $0x18] sm:$0xff]  ;;  %v216_v6 = vld [vmem:[%s197_s30] sm:$0xff]  ;;  %s1173_s28 = sshll.u32 %s186_s27, 8 }
  0x1b   : > { %v748_v7 = vpack.c.bf16 %v219_v5, %v217_v4  ;;  %v218_v8 = vld [vmem:[%s197_s30 + $0x10] sm:$0xff]  ;;  %v221_v9 = vld [vmem:[%s197_s30 + $0x28] sm:$0xff]  ;;  %v223_v10 = vld [vmem:[%s197_s30 + $0x38] sm:$0xff]  ;;  %s1178_s29 = scalar_lea.vmem [#allocation2], %s1173_s28 }
  0x1c   : > { %v750_v11 = vpack.c.bf16 %v218_v8, %v216_v6  ;;  %v752_v12 = vpack.c.bf16 %v223_v10, %v221_v9  ;;  %v220_v13 = vld [vmem:[%s197_s30 + $0x20] sm:$0xff]  ;;  %v222_v14 = vld [vmem:[%s197_s30 + $0x30] sm:$0xff]  ;;  %s747_s30 = sshll.u32 %s939_s15, 12  ;;  %s634_s4 = sshll.u32 %s1178_s29, 4  ;;  %s1227_s4 = int_to_ptr.vmem [resolvable:$true] %s634_s4 }
  0x1d   : > { %749 = vmatprep.subr.bf16.mxu0 %v748_v7  ;;  %756 = vmatprep.subr.bf16.mxu1 %v748_v7  ;;  %v754_v17 = vpack.c.bf16 %v222_v14, %v220_v13  ;;  %s1225_s7 = scalar_lea.hbm %s1282_s3, %s747_s30  ;;  %s1233_s15 = scalar_lea.sflag [#allocation3], %s186_s27 }
  0x1e   : > { %751 = vmatpush1.bf16.msra.mxu0 %v750_v11  ;;  %758 = vmatpush1.bf16.msra.mxu1 %v750_v11  ;;  %s869_s8 = scalar_lea.vmem %s1227_s4, 4096  ;;  %p876_p1 = scmp.lt.s32.totalorder %s1227_s4, %s874_s10 }
  0x1f   : > { %753 = vmatprep.subr.bf16.mxu0 %v752_v12  ;;  %757 = vmatprep.subr.bf16.mxu1 %v752_v12  ;;  %p870_p12 = scmp.ne.s32.totalorder %s1227_s4, %s869_s8  ;;  %p877_p2 = scmp.lt.s32.totalorder %s875_s11, %s869_s8 }
  0x20   : > { %302 = vperm.xlu0 %819, %v236_v22   ;;  %307 = vperm.xlu1 %820, %v237_v23  }
  0x21   : > { %p871_p13 = pnand %p870_p12, %p1014_p4  ;;  %p878_p3 = por %p877_p2, %p876_p1 }
  0x22   : > { %755 = vmatpush1.bf16.msra.mxu0 %v754_v17  ;;  %759 = vmatpush1.bf16.msra.mxu1 %v754_v17 }
  0x23   : > { %p872_p0 = pneg %p871_p13 }
  0x24   : > { %312 = vperm.xlu0 %819, %v238_v26   ;;  %317 = vperm.xlu1 %820, %v239_v27  }
  0x25   : > { %721 = vmatmul.mubr.msk.f32.vlgmr.msra.gmra.mrb[0].mxu0 %vm320_vm0, %v200_v20  ;;  %729 = vmatmul.mubr.msk.f32.vlgmr.msra.gmra.mrb[0].mxu1 %vm320_vm0, %v208_v21  ;;  %p879_p5 = pnand %p878_p3, %p872_p0 }
  0x26   : > { %439 = vmatprep.mubr.f32.mxu0 %v949_v0  ;;  %487 = vmatprep.mubr.f32.mxu1 %v949_v0 }
  0x28   : > { %252 = vperm.xlu0 %819, %v226_v30   ;;  %257 = vperm.xlu1 %820, %v227_v31  }
  0x29   : > { %722 = vmatmul.mubr.msk.f32.gmra.mrb[2].mxu0 %vm320_vm0, %v201_v24  ;;  %730 = vmatmul.mubr.msk.f32.gmra.mrb[2].mxu1 %vm320_vm0, %v209_v25 }
  0x2a   : > { %445 = vmatprep.mubr.f32.mxu0 %v949_v0  ;;  %493 = vmatprep.mubr.f32.mxu1 %v949_v0 }
  0x2c   : > { %262 = vperm.xlu0 %819, %v228_v34   ;;  %267 = vperm.xlu1 %820, %v229_v35  }
  0x2d   : > { %723 = vmatmul.mubr.msk.f32.gmra.mrb[4].mxu0 %vm320_vm0, %v202_v28  ;;  %731 = vmatmul.mubr.msk.f32.gmra.mrb[4].mxu1 %vm320_vm0, %v210_v29 }
  0x2e   : > { %451 = vmatprep.mubr.f32.mxu0 %v949_v0  ;;  %499 = vmatprep.mubr.f32.mxu1 %v949_v0 }
  0x30   : > { %272 = vperm.xlu0 %819, %v230_v38   ;;  %277 = vperm.xlu1 %820, %v231_v39  }
  0x31   : > { %724 = vmatmul.mubr.msk.f32.gmra.mrb[6].mxu0 %vm320_vm0, %v203_v32  ;;  %732 = vmatmul.mubr.msk.f32.gmra.mrb[6].mxu1 %vm320_vm0, %v211_v33 }
  0x32   : > { %457 = vmatprep.mubr.f32.mxu0 %v949_v0  ;;  %505 = vmatprep.mubr.f32.mxu1 %v949_v0 }
  0x35   : > { %725 = vmatmul.mubr.msk.f32.gmra.mrb[8].mxu0 %vm320_vm0, %v204_v36  ;;  %733 = vmatmul.mubr.msk.f32.gmra.mrb[8].mxu1 %vm320_vm0, %v212_v37 }
  0x36   : > { %463 = vmatprep.mubr.f32.mxu0 %v949_v0  ;;  %511 = vmatprep.mubr.f32.mxu1 %v949_v0 }
  0x39   : > { %726 = vmatmul.mubr.msk.f32.gmra.mrb[10].mxu0 %vm320_vm0, %v205_v40  ;;  %734 = vmatmul.mubr.msk.f32.gmra.mrb[10].mxu1 %vm320_vm0, %v213_v41 }
  0x3a   : > { %469 = vmatprep.mubr.f32.mxu0 %v949_v0  ;;  %517 = vmatprep.mubr.f32.mxu1 %v949_v0 }
  0x3d   : > { %727 = vmatmul.mubr.msk.f32.gmra.mrb[12].mxu0 %vm320_vm0, %v206_v42  ;;  %735 = vmatmul.mubr.msk.f32.gmra.mrb[12].mxu1 %vm320_vm0, %v214_v43 }
  0x3e   : > { %475 = vmatprep.mubr.f32.mxu0 %v949_v0  ;;  %523 = vmatprep.mubr.f32.mxu1 %v949_v0 }
  0x41   : > { %728 = vmatmul.mubr.msk.f32.gmra.mrb[14].mxu0 %vm320_vm0, %v207_v44  ;;  %736 = vmatmul.mubr.msk.f32.gmra.mrb[14].mxu1 %vm320_vm0, %v215_v45 }
  0x90   : > { %v243_v46 = vpop.permute.xlu0 %242  ;;  %v283_v47 = vpop.permute.xlu1 %282 }
  0x94   : > { %v248_v48 = vpop.permute.xlu0 %247  ;;  %v288_v49 = vpop.permute.xlu1 %287 }
  0x98   : > { %v293_v50 = vpop.permute.xlu0 %292  ;;  %v1162_v51 = vpop.permute.xlu1 %297 }
  0x9f   : > { %v1164_v52 = vpop.permute.xlu0 %302  ;;  %v1166_v53 = vpop.permute.xlu1 %307 }
  0xa3   : > { %v1168_v54 = vpop.permute.xlu0 %312  ;;  %v1175_v0 = vpop.permute.xlu1 %317 }
  0xa7   : > { %v253_v12 = vpop.permute.xlu0 %252  ;;  %v258_v25 = vpop.permute.xlu1 %257 }
  0xab   : > { %v263_v37 = vpop.permute.xlu0 %262 }
  0xf8   : > { %v483_v55 = vpop.f32.mrb[0].mxu1  ;;  %v435_v56 = vpop.f32.mrb[0].mxu0 }
  0xf9   : > { %v484_v57 = vadd.f32 %v483_v55, %v283_v47  ;;  %v485_v58 = vpop.f32.mrb[1].mxu1  ;;  %v436_v59 = vadd.f32 %v435_v56, %v243_v46  ;;  %v437_v60 = vpop.f32.mrb[1].mxu0 }
  0xfa   : > { %v486_v61 = vadd.f32 %v485_v58, %v283_v47  ;;  %v438_v62 = vadd.f32 %v437_v60, %v243_v46 }
  0xfb   : > { %v570_v63 = vmul.f32 1.442695, %v484_v57  ;;  %v737_v1 = vmul.f32 -1.442695, %v436_v59  ;;  %v268_v57 = vpop.permute.xlu1 %267 }
  0xfc   : > { %v572_v2 = vmul.f32 1.442695, %v486_v61  ;;  %v489_v3 = vpop.f32.mrb[2].mxu1  ;;  %v738_v4 = vmul.f32 -1.442695, %v438_v62  ;;  %v441_v5 = vpop.f32.mrb[2].mxu0 }
  0xfd   : > { %821 = vpow2.f32 %v570_v63  ;;  %v490_v6 = vadd.f32 %v489_v3, %v288_v49  ;;  %v491_v7 = vpop.f32.mrb[3].mxu1  ;;  %v442_v8 = vadd.f32 %v441_v5, %v248_v48  ;;  %v443_v9 = vpop.f32.mrb[3].mxu0 }
  0xfe   : > { %823 = vpow2.f32 %v572_v2  ;;  %v492_v10 = vadd.f32 %v491_v7, %v288_v49  ;;  %v444_v11 = vadd.f32 %v443_v9, %v248_v48 }
  0xff   : > { %v574_v13 = vmul.f32 1.442695, %v490_v6  ;;  %825 = vpow2.f32 %v737_v1  ;;  %v739_v14 = vmul.f32 -1.442695, %v442_v8 }
 0x100   : > { %v576_v15 = vmul.f32 1.442695, %v492_v10  ;;  %827 = vpow2.f32 %v738_v4  ;;  %v495_v16 = vpop.f32.mrb[4].mxu1  ;;  %v740_v17 = vmul.f32 -1.442695, %v444_v11  ;;  %v447_v18 = vpop.f32.mrb[4].mxu0 }
 0x101   : > { %829 = vpow2.f32 %v574_v13  ;;  %v496_v19 = vadd.f32 %v495_v16, %v293_v50  ;;  %v497_v20 = vpop.f32.mrb[5].mxu1  ;;  %v448_v21 = vadd.f32 %v447_v18, %v253_v12  ;;  %v449_v22 = vpop.f32.mrb[5].mxu0 }
 0x102   : > { %831 = vpow2.f32 %v576_v15  ;;  %v498_v23 = vadd.f32 %v497_v20, %v293_v50  ;;  %v450_v24 = vadd.f32 %v449_v22, %v253_v12  ;;  %v273_v10 = vpop.permute.xlu0 %272  ;;  %v278_v22 = vpop.permute.xlu1 %277 }
 0x103   : > { %833 = vpow2.f32 %v739_v14  ;;  %v578_v26 = vmul.f32 1.442695, %v496_v19  ;;  %558 = vst [vmem:[%s1178_s29 + $0x20] sm:$0xff] %v448_v21 }
 0x104   : > { %835 = vpow2.f32 %v740_v17  ;;  %v580_v27 = vmul.f32 1.442695, %v498_v23  ;;  %559 = vst [vmem:[%s1178_s29 + $0x28] sm:$0xff] %v450_v24  ;;  %v453_v28 = vpop.f32.mrb[6].mxu0  ;;  %v501_v29 = vpop.f32.mrb[6].mxu1 }
 0x105   : > { %837 = vpow2.f32 %v578_v26  ;;  %v454_v30 = vadd.f32 %v453_v28, %v258_v25  ;;  %v502_v31 = vadd.f32 %v501_v29, %v1162_v51  ;;  %v455_v32 = vpop.f32.mrb[7].mxu0  ;;  %v503_v33 = vpop.f32.mrb[7].mxu1 }
 0x106   : > { %839 = vpow2.f32 %v580_v27  ;;  %v456_v34 = vadd.f32 %v455_v32, %v258_v25  ;;  %v504_v35 = vadd.f32 %v503_v33, %v1162_v51 }
 0x107   : > { %v822_v36 = vpop.eup %821  ;;  %560 = vst [vmem:[%s1178_s29 + $0x30] sm:$0xff] %v454_v30  ;;  %v582_v38 = vmul.f32 1.442695, %v502_v31 }
 0x108   : > { %v824_v39 = vpop.eup %823  ;;  %602 = vst [vmem:[%s1178_s29 + $0x80] sm:$0xff] %v822_v36  ;;  %561 = vst [vmem:[%s1178_s29 + $0x38] sm:$0xff] %v456_v34  ;;  %v584_v40 = vmul.f32 1.442695, %v504_v35  ;;  %v459_v41 = vpop.f32.mrb[8].mxu0 }
 0x109   : > { %v507_v42 = vpop.f32.mrb[8].mxu1  ;;  %v826_v43 = vpop.eup %825  ;;  %603 = vst [vmem:[%s1178_s29 + $0x88] sm:$0xff] %v824_v39  ;;  %841 = vpow2.f32 %v582_v38  ;;  %v460_v44 = vadd.f32 %v459_v41, %v263_v37 }
 0x10a   : > { %v508_v45 = vadd.f32 %v507_v42, %v1164_v52  ;;  %v461_v46 = vpop.f32.mrb[9].mxu0  ;;  %v509_v47 = vpop.f32.mrb[9].mxu1  ;;  %v542_v49 = vadd.f32 1.0, %v826_v43  ;;  %843 = vpow2.f32 %v584_v40 }
 0x10b   : > { %v828_v48 = vpop.eup %827  ;;  %v462_v50 = vadd.f32 %v461_v46, %v263_v37  ;;  %v510_v51 = vadd.f32 %v509_v47, %v1164_v52  ;;  %562 = vst [vmem:[%s1178_s29 + $0x40] sm:$0xff] %v460_v44 }
 0x10c   : > { %v830_v55 = vpop.eup %829  ;;  %v543_v56 = vadd.f32 1.0, %v828_v48  ;;  %v586_v58 = vmul.f32 1.442695, %v508_v45  ;;  %845 = vrcp.f32 %v542_v49  ;;  %v465_v61 = vpop.f32.mrb[10].mxu0 }
 0x10d   : > { %v832_v59 = vpop.eup %831  ;;  %604 = vst [vmem:[%s1178_s29 + $0x90] sm:$0xff] %v830_v55  ;;  %563 = vst [vmem:[%s1178_s29 + $0x48] sm:$0xff] %v462_v50  ;;  %v588_v60 = vmul.f32 1.442695, %v510_v51  ;;  %v513_v62 = vpop.f32.mrb[10].mxu1  ;;  %v466_v1 = vadd.f32 %v465_v61, %v268_v57 }
 0x10e   : > { %v834_v63 = vpop.eup %833  ;;  %605 = vst [vmem:[%s1178_s29 + $0x98] sm:$0xff] %v832_v59  ;;  %847 = vrcp.f32 %v543_v56  ;;  %v514_v2 = vadd.f32 %v513_v62, %v1166_v53  ;;  %v467_v52 = vpop.f32.mrb[11].mxu0 }
 0x10f   : > { %v515_v3 = vpop.f32.mrb[11].mxu1  ;;  %v836_v4 = vpop.eup %835  ;;  %v544_v5 = vadd.f32 1.0, %v834_v63  ;;  %849 = vpow2.f32 %v586_v58  ;;  %v468_v6 = vadd.f32 %v467_v52, %v268_v57  ;;  %564 = vst [vmem:[%s1178_s29 + $0x50] sm:$0xff] %v466_v1 }
 0x110   : > { %v516_v7 = vadd.f32 %v515_v3, %v1166_v53  ;;  %v838_v8 = vpop.eup %837  ;;  %v545_v9 = vadd.f32 1.0, %v836_v4  ;;  %851 = vpow2.f32 %v588_v60  ;;  %v590_v11 = vmul.f32 1.442695, %v514_v2  ;;  %v471_v14 = vpop.f32.mrb[12].mxu0 }
 0x111   : > { %v840_v12 = vpop.eup %839  ;;  %853 = vrcp.f32 %v544_v5  ;;  %606 = vst [vmem:[%s1178_s29 + $0xa0] sm:$0xff] %v838_v8  ;;  %565 = vst [vmem:[%s1178_s29 + $0x58] sm:$0xff] %v468_v6  ;;  %v519_v15 = vpop.f32.mrb[12].mxu1  ;;  %v472_v16 = vadd.f32 %v471_v14, %v273_v10 }
 0x112   : > { %v592_v13 = vmul.f32 1.442695, %v516_v7  ;;  %855 = vrcp.f32 %v545_v9  ;;  %607 = vst [vmem:[%s1178_s29 + $0xa8] sm:$0xff] %v840_v12  ;;  %v520_v53 = vadd.f32 %v519_v15, %v1168_v54  ;;  %v473_v17 = vpop.f32.mrb[13].mxu0  ;;  %v521_v18 = vpop.f32.mrb[13].mxu1 }
 0x113   : > { %857 = vpow2.f32 %v590_v11  ;;  %v474_v19 = vadd.f32 %v473_v17, %v273_v10  ;;  %v522_v20 = vadd.f32 %v521_v18, %v1168_v54  ;;  %v842_v21 = vpop.eup %841  ;;  %566 = vst [vmem:[%s1178_s29 + $0x60] sm:$0xff] %v472_v16 }
 0x114   : > { %859 = vpow2.f32 %v592_v13  ;;  %v594_v23 = vmul.f32 1.442695, %v520_v53  ;;  %v844_v24 = vpop.eup %843  ;;  %608 = vst [vmem:[%s1178_s29 + $0xb0] sm:$0xff] %v842_v21  ;;  %v477_v26 = vpop.f32.mrb[14].mxu0 }
 0x115   : > { %567 = vst [vmem:[%s1178_s29 + $0x68] sm:$0xff] %v474_v19  ;;  %v596_v25 = vmul.f32 1.442695, %v522_v20  ;;  %v525_v27 = vpop.f32.mrb[14].mxu1  ;;  %609 = vst [vmem:[%s1178_s29 + $0xb8] sm:$0xff] %v844_v24  ;;  %v478_v28 = vadd.f32 %v477_v26, %v278_v22  ;;  %v479_v29 = vpop.f32.mrb[15].mxu0 }
 0x116   : > { %861 = vpow2.f32 %v594_v23  ;;  %v526_v54 = vadd.f32 %v525_v27, %v1175_v0  ;;  %v527_v30 = vpop.f32.mrb[15].mxu1  ;;  %v846_v31 = vpop.eup %845  ;;  %v480_v32 = vadd.f32 %v479_v29, %v278_v22 }
 0x117   : > { %863 = vpow2.f32 %v596_v25  ;;  %v528_v33 = vadd.f32 %v527_v30, %v1175_v0  ;;  %554 = vst [vmem:[%s1178_s29] sm:$0xff] %v846_v31  ;;  %568 = vst [vmem:[%s1178_s29 + $0x70] sm:$0xff] %v478_v28 }
 0x118   : > { %v848_v34 = vpop.eup %847  ;;  %v598_v35 = vmul.f32 1.442695, %v526_v54  ;;  %569 = vst [vmem:[%s1178_s29 + $0x78] sm:$0xff] %v480_v32 }
 0x119   : > { %v850_v36 = vpop.eup %849  ;;  %555 = vst [vmem:[%s1178_s29 + $0x8] sm:$0xff] %v848_v34  ;;  %v600_v37 = vmul.f32 1.442695, %v528_v33 }
 0x11a   : > { %v852_v38 = vpop.eup %851  ;;  %610 = vst [vmem:[%s1178_s29 + $0xc0] sm:$0xff] %v850_v36  ;;  %865 = vpow2.f32 %v598_v35 }
 0x11b   : > { %v854_v0 = vpop.eup %853  ;;  %611 = vst [vmem:[%s1178_s29 + $0xc8] sm:$0xff] %v852_v38  ;;  %867 = vpow2.f32 %v600_v37 }
 0x11c   : > { %v856_v39 = vpop.eup %855  ;;  %556 = vst [vmem:[%s1178_s29 + $0x10] sm:$0xff] %v854_v0 }
 0x11d   : > { %v858_v40 = vpop.eup %857  ;;  %557 = vst [vmem:[%s1178_s29 + $0x18] sm:$0xff] %v856_v39 }
 0x11e   : > { %v860_v41 = vpop.eup %859  ;;  %612 = vst [vmem:[%s1178_s29 + $0xd0] sm:$0xff] %v858_v40 }
 0x11f   : > { %613 = vst [vmem:[%s1178_s29 + $0xd8] sm:$0xff] %v860_v41 }
 0x120   : > { %v862_v42 = vpop.eup %861 }
 0x121   : > { %v864_v43 = vpop.eup %863  ;;  %614 = vst [vmem:[%s1178_s29 + $0xe0] sm:$0xff] %v862_v42 }
 0x122   : > { %615 = vst [vmem:[%s1178_s29 + $0xe8] sm:$0xff] %v864_v43 }
 0x124   : > { %v866_v44 = vpop.eup %865 }
 0x125   : > { %v868_v45 = vpop.eup %867  ;;  %616 = vst [vmem:[%s1178_s29 + $0xf0] sm:$0xff] %v866_v44 }
 0x126   : > { %617 = vst [vmem:[%s1178_s29 + $0xf8] sm:$0xff] %v868_v45 }
 0x127   : > { %882 = shalt.err (!%p879_p5)
}
 0x128   : > { %s883_s18 = scalar_lea.hbm %s1225_s7, 4096  ;;  %s887_s23 = scalar_lea.hbm %s1282_s3, 8192 }
 0x129   : > { %p884_p6 = scmp.ne.s32.totalorder %s1225_s7, %s883_s18  ;;  %p888_p10 = scmp.lt.u32.totalorder %s1225_s7, %s1282_s3 }
 0x12a   : > { %p889_p11 = scmp.lt.u32.totalorder %s887_s23, %s883_s18  ;;  %p891_p13 = scmp.lt.u32.totalorder %s883_s18, %s1225_s7 }
 0x12b   : > { %p885_p7 = pnand %p884_p6, %p1014_p4 }
 0x12c   : > { %p890_p12 = por %p889_p11, %p888_p10 }
 0x12d   : > { %p886_p9 = pneg %p885_p7 }
 0x12e   : > { %p892_p0 = por %p891_p13, %p890_p12 }
 0x130   : > { %p893_p1 = pnand %p892_p0, %p886_p9 }
 0x132   : > { %896 = shalt.err (!%p893_p1)
}
 0x133   : > { %s952_s28 = smov 256   ;;  %s953_s29 = smov 16  }
 0x134   : > { %760 = dma.vmem_to_hbm [thread:$0]  (%p1014_p4), %s1227_s4, 4096, %s1225_s7, %s1233_s15, %s952_s28, %s952_s28, %s953_s29  }
 0x135 PF: > { %p766_p2 = scmp.ge.s32.totalorder %s947_s17, 2  ;;  %s649_s30 = sand.u32 1, %s927_s12  }
 0x136   : > { %s650_s5 = scalar_lea.sflag [#allocation3], %s649_s30 }
 0x137   : > { %p763_p3 = pnand %p766_p2, %p1021_p8 }
 0x139   : > { %922 = dma.done.wait (!%p763_p3), %s650_s5, 4096  }
 0x13a   : > { %924 = vsyncadd (!%p763_p3), %s650_s5, 4294963200  ;;  %s16_s17 = sadd.s32 1, %s947_s17   ;;  %s1285_s12 = smov %s931_s13 }
 0x13b   : > { %p13_p5 = scmp.ge.s32.totalorder %s16_s17, 4   ;;  %s1286_s13 = smov %s935_s14 }
 0x13c   : > { %s1287_s14 = smov %s1027_s25  ;;  %s1288_s15 = smov %s943_s16 }
 0x13d   : > { %s1289_s16 = smov %s1291_s20  ;;  %15 = sbr.rel (!%p13_p5) target bundleno = 4 (0x4), region = 67 }
 0x144   :  { %655 = vsyncpa [#allocation3], 1 }
 0x145   :  { %657 = vsyncpa [#allocation3 + $0x1], 1 }

// kernel: tpu_custom_call.1
= control target key start
LH: loop header
LB: loop body
LE: loop exit
PB: predicated region body
PF: predicated region fallthrough
CT: control target
= control target key end

     0   :  { %8 = vsyncpa [#allocation3], 0  ;;  %s1279_s0 = inlined_call_operand.vmem [shape: f32[128,32], index: 0, kind: input, shape index: {}]   ;;  %s1280_s1 = inlined_call_operand.vmem [shape: f32[128,1], index: 1, kind: input, shape index: {}]   ;;  %s1281_s2 = inlined_call_operand.vmem [shape: f32[2,32,256], index: 2, kind: input, shape index: {}]   ;;  %s1282_s3 = inlined_call_operand.hbm [shape: f32[2,128,256], index: 3, kind: output, shape index: {}]  }
   0x1   :  { %10 = vsyncpa [#allocation3 + $0x1], 0  ;;  %s974_s12 = smov 0   ;;  %s976_s13 = smov 0  }
   0x2   :  { %s978_s14 = smov 0   ;;  %s980_s15 = smov 0  }
   0x3   :  { %s982_s16 = smov 0   ;;  %s984_s17 = smov 0  }
   0x4 LB: > { %s713_s18 = sadd.s32 4294967295, %s947_s17   ;;  %s714_s19 = sadd.s32 4294967294, %s947_s17   ;;  %s947_s17 = sphi %s984_s17, %s16_s17   ;;  %s943_s16 = sphi %s982_s16, %s1289_s16   ;;  %s939_s15 = sphi %s980_s15, %s1288_s15   ;;  %s935_s14 = sphi %s978_s14, %s1287_s14   ;;  %s931_s13 = sphi %s976_s13, %s1286_s13   ;;  %s927_s12 = sphi %s974_s12, %s1285_s12  }
   0x5   : > { %s28_s20 = sadd.s32 1, %s943_s16  ;;  %s107_s21 = sadd.s32 1, %s935_s14 }
   0x6   : > { %p30_p0 = scmp.ge.s32.totalorder %s28_s20, 2  ;;  %p117_p1 = scmp.ne.s32.totalorder %s935_s14, %s931_s13 }
   0x7   : > { %p118_p2 = scmp.eq.s32.totalorder %s713_s18, 1  ;;  %p123_p3 = scmp.ne.s32.totalorder %s931_s13, %s927_s12 }
   0x8   : > { %s1291_s20 = smov (%p30_p0, %s28_s20), 0  ;;  %p124_p5 = scmp.eq.s32.totalorder %s714_s19, 1 }
   0x9   : > { %p1014_p4 = por %p118_p2, %p117_p1  ;;  %s102_s23 = ssub.s32 %s943_s16, %s1291_s20 }
   0xa   : > { %p717_p6 = scmp.ge.s32.totalorder %s947_s17, 1  ;;  %p105_p7 = scmp.eq.s32.totalorder %s102_s23, 0 }
   0xb   : > { %p1021_p8 = por %p124_p5, %p123_p3  ;;  %p161_p9 = scmp.lt.s32.totalorder %s947_s17, 3 }
   0xc   : > { %s1027_s25 = scalar_select %p105_p7, %s935_s14, %s107_s21  }
   0xd   : > { %p162_p10 = pnand %p717_p6, %p161_p9 }
   0xe   : > { %p190_p11 = scmp.lt.s32.totalorder (!%p162_p10), %s939_s15, 1  ;;  %v949_v0 = vmov (!%p162_p10), 0.0   ;;  %v950_v1 = vmov (!%p162_p10), 0   ;;  %v224_v2 = vld [vmem:[%s1280_s1] sm:$0xff] (!%p162_p10)  ;;  %v225_v15 = vld [vmem:[%s1280_s1 + $0x8] sm:$0xff] (!%p162_p10)  ;;  %v234_v18 = vld [vmem:[%s1280_s1 + $0x50] sm:$0xff] (!%p162_p10) }
   0xf   : > { %165 = sbr.rel (%p162_p10) target bundleno = 309 (0x135), region = 32  ;;  %433 = vmatprep.mubr.f32.mxu0 (!%p162_p10), %v949_v0  ;;  %481 = vmatprep.mubr.f32.mxu1 (!%p162_p10), %v949_v0  ;;  %v232_v3 = vld [vmem:[%s1280_s1 + $0x40] sm:$0xff] (!%p162_p10)  ;;  %v233_v16 = vld [vmem:[%s1280_s1 + $0x48] sm:$0xff] (!%p162_p10)  ;;  %v235_v19 = vld [vmem:[%s1280_s1 + $0x58] sm:$0xff] (!%p162_p10)  ;;  %vm320_vm0 = vcmask (!%p162_p10), 261120   ;;  %s951_s9 = smov (!%p162_p10), [#allocation2]  }
  0x10   : > { %819 = vset.pattern.permute.xlu0 (!%p162_p10), %v950_v1  ;;  %820 = vset.pattern.permute.xlu1 (!%p162_p10), %v950_v1  ;;  %v200_v20 = vld [vmem:[%s1279_s0] sm:$0xff] (!%p162_p10)  ;;  %v237_v23 = vld [vmem:[%s1280_s1 + $0x68] sm:$0xff] (!%p162_p10)  ;;  %v238_v26 = vld [vmem:[%s1280_s1 + $0x70] sm:$0xff] (!%p162_p10)  ;;  %s873_s10 = sshll.u32 (!%p162_p10), %s951_s9, 4  ;;  %s874_s10 = int_to_ptr.vmem [resolvable:$false] %s873_s10 }
  0x11   : > { %242 = vperm.xlu0 (!%p162_p10), %819, %v224_v2   ;;  %282 = vperm.xlu1 (!%p162_p10), %820, %v232_v3   ;;  %v208_v21 = vld [vmem:[%s1279_s0 + $0x40] sm:$0xff] (!%p162_p10)  ;;  %v201_v24 = vld [vmem:[%s1279_s0 + $0x8] sm:$0xff] (!%p162_p10)  ;;  %v239_v27 = vld [vmem:[%s1280_s1 + $0x78] sm:$0xff] (!%p162_p10)  ;;  %s875_s11 = scalar_lea.vmem (!%p162_p10), %s874_s10, 8192 }
  0x12   : > { %v236_v22 = vld [vmem:[%s1280_s1 + $0x60] sm:$0xff] (!%p162_p10)  ;;  %v209_v25 = vld [vmem:[%s1279_s0 + $0x48] sm:$0xff] (!%p162_p10)  ;;  %v202_v28 = vld [vmem:[%s1279_s0 + $0x10] sm:$0xff] (!%p162_p10) }
  0x13   : > { %v210_v29 = vld [vmem:[%s1279_s0 + $0x50] sm:$0xff] (!%p162_p10)  ;;  %v227_v31 = vld [vmem:[%s1280_s1 + $0x18] sm:$0xff] (!%p162_p10)  ;;  %v228_v34 = vld [vmem:[%s1280_s1 + $0x20] sm:$0xff] (!%p162_p10) }
  0x14   : > { %v226_v30 = vld [vmem:[%s1280_s1 + $0x10] sm:$0xff] (!%p162_p10)  ;;  %v203_v32 = vld [vmem:[%s1279_s0 + $0x18] sm:$0xff] (!%p162_p10)  ;;  %v229_v35 = vld [vmem:[%s1280_s1 + $0x28] sm:$0xff] (!%p162_p10) }
  0x15   : > { %247 = vperm.xlu0 (!%p162_p10), %819, %v225_v15   ;;  %287 = vperm.xlu1 (!%p162_p10), %820, %v233_v16   ;;  %v211_v33 = vld [vmem:[%s1279_s0 + $0x58] sm:$0xff] (!%p162_p10)  ;;  %v204_v36 = vld [vmem:[%s1279_s0 + $0x20] sm:$0xff] (!%p162_p10)  ;;  %v230_v38 = vld [vmem:[%s1280_s1 + $0x30] sm:$0xff] (!%p162_p10) }
  0x16   : > { %s191_s26 = scalar_select %p190_p11, %s939_s15, 1  ;;  %v212_v37 = vld [vmem:[%s1279_s0 + $0x60] sm:$0xff]  ;;  %v231_v39 = vld [vmem:[%s1280_s1 + $0x38] sm:$0xff]  ;;  %v205_v40 = vld [vmem:[%s1279_s0 + $0x28] sm:$0xff] }
  0x17   : > { %v213_v41 = vld [vmem:[%s1279_s0 + $0x68] sm:$0xff]  ;;  %v206_v42 = vld [vmem:[%s1279_s0 + $0x30] sm:$0xff]  ;;  %v207_v44 = vld [vmem:[%s1279_s0 + $0x38] sm:$0xff] }
  0x18   : > { %s746_s27 = sshll.u32 %s191_s26, 6  ;;  %v214_v43 = vld [vmem:[%s1279_s0 + $0x70] sm:$0xff]  ;;  %v215_v45 = vld [vmem:[%s1279_s0 + $0x78] sm:$0xff] }
  0x19   : > { %s197_s30 = scalar_lea.vmem %s1281_s2, %s746_s27  ;;  %292 = vperm.xlu0 %819, %v234_v18   ;;  %297 = vperm.xlu1 %820, %v235_v19   ;;  %s186_s27 = sand.u32 1, %s931_s13  }
  0x1a   : > { %v217_v4 = vld [vmem:[%s197_s30 + $0x8] sm:$0xff]  ;;  %v219_v5 = vld [vmem:[%s197_s30 + $0x18] sm:$0xff]  ;;  %v216_v6 = vld [vmem:[%s197_s30] sm:$0xff]  ;;  %s1173_s28 = sshll.u32 %s186_s27, 8 }
  0x1b   : > { %v748_v7 = vpack.c.bf16 %v219_v5, %v217_v4  ;;  %v218_v8 = vld [vmem:[%s197_s30 + $0x10] sm:$0xff]  ;;  %v221_v9 = vld [vmem:[%s197_s30 + $0x28] sm:$0xff]  ;;  %v223_v10 = vld [vmem:[%s197_s30 + $0x38] sm:$0xff]  ;;  %s1178_s29 = scalar_lea.vmem [#allocation2], %s1173_s28 }
  0x1c   : > { %v750_v11 = vpack.c.bf16 %v218_v8, %v216_v6  ;;  %v752_v12 = vpack.c.bf16 %v223_v10, %v221_v9  ;;  %v220_v13 = vld [vmem:[%s197_s30 + $0x20] sm:$0xff]  ;;  %v222_v14 = vld [vmem:[%s197_s30 + $0x30] sm:$0xff]  ;;  %s747_s30 = sshll.u32 %s939_s15, 12  ;;  %s634_s4 = sshll.u32 %s1178_s29, 4  ;;  %s1227_s4 = int_to_ptr.vmem [resolvable:$true] %s634_s4 }
  0x1d   : > { %749 = vmatprep.subr.bf16.mxu0 %v748_v7  ;;  %756 = vmatprep.subr.bf16.mxu1 %v748_v7  ;;  %v754_v17 = vpack.c.bf16 %v222_v14, %v220_v13  ;;  %s1225_s7 = scalar_lea.hbm %s1282_s3, %s747_s30  ;;  %s1233_s15 = scalar_lea.sflag [#allocation3], %s186_s27 }
  0x1e   : > { %751 = vmatpush1.bf16.msra.mxu0 %v750_v11  ;;  %758 = vmatpush1.bf16.msra.mxu1 %v750_v11  ;;  %s869_s8 = scalar_lea.vmem %s1227_s4, 4096  ;;  %p876_p1 = scmp.lt.s32.totalorder %s1227_s4, %s874_s10 }
  0x1f   : > { %753 = vmatprep.subr.bf16.mxu0 %v752_v12  ;;  %757 = vmatprep.subr.bf16.mxu1 %v752_v12  ;;  %p870_p12 = scmp.ne.s32.totalorder %s1227_s4, %s869_s8  ;;  %p877_p2 = scmp.lt.s32.totalorder %s875_s11, %s869_s8 }
  0x20   : > { %302 = vperm.xlu0 %819, %v236_v22   ;;  %307 = vperm.xlu1 %820, %v237_v23  }
  0x21   : > { %p871_p13 = pnand %p870_p12, %p1014_p4  ;;  %p878_p3 = por %p877_p2, %p876_p1 }
  0x22   : > { %755 = vmatpush1.bf16.msra.mxu0 %v754_v17  ;;  %759 = vmatpush1.bf16.msra.mxu1 %v754_v17 }
  0x23   : > { %p872_p0 = pneg %p871_p13 }
  0x24   : > { %312 = vperm.xlu0 %819, %v238_v26   ;;  %317 = vperm.xlu1 %820, %v239_v27  }
  0x25   : > { %721 = vmatmul.mubr.msk.f32.vlgmr.msra.gmra.mrb[0].mxu0 %vm320_vm0, %v200_v20  ;;  %729 = vmatmul.mubr.msk.f32.vlgmr.msra.gmra.mrb[0].mxu1 %vm320_vm0, %v208_v21  ;;  %p879_p5 = pnand %p878_p3, %p872_p0 }
  0x26   : > { %439 = vmatprep.mubr.f32.mxu0 %v949_v0  ;;  %487 = vmatprep.mubr.f32.mxu1 %v949_v0 }
  0x28   : > { %252 = vperm.xlu0 %819, %v226_v30   ;;  %257 = vperm.xlu1 %820, %v227_v31  }
  0x29   : > { %722 = vmatmul.mubr.msk.f32.gmra.mrb[2].mxu0 %vm320_vm0, %v201_v24  ;;  %730 = vmatmul.mubr.msk.f32.gmra.mrb[2].mxu1 %vm320_vm0, %v209_v25 }
  0x2a   : > { %445 = vmatprep.mubr.f32.mxu0 %v949_v0  ;;  %493 = vmatprep.mubr.f32.mxu1 %v949_v0 }
  0x2c   : > { %262 = vperm.xlu0 %819, %v228_v34   ;;  %267 = vperm.xlu1 %820, %v229_v35  }
  0x2d   : > { %723 = vmatmul.mubr.msk.f32.gmra.mrb[4].mxu0 %vm320_vm0, %v202_v28  ;;  %731 = vmatmul.mubr.msk.f32.gmra.mrb[4].mxu1 %vm320_vm0, %v210_v29 }
  0x2e   : > { %451 = vmatprep.mubr.f32.mxu0 %v949_v0  ;;  %499 = vmatprep.mubr.f32.mxu1 %v949_v0 }
  0x30   : > { %272 = vperm.xlu0 %819, %v230_v38   ;;  %277 = vperm.xlu1 %820, %v231_v39  }
  0x31   : > { %724 = vmatmul.mubr.msk.f32.gmra.mrb[6].mxu0 %vm320_vm0, %v203_v32  ;;  %732 = vmatmul.mubr.msk.f32.gmra.mrb[6].mxu1 %vm320_vm0, %v211_v33 }
  0x32   : > { %457 = vmatprep.mubr.f32.mxu0 %v949_v0  ;;  %505 = vmatprep.mubr.f32.mxu1 %v949_v0 }
  0x35   : > { %725 = vmatmul.mubr.msk.f32.gmra.mrb[8].mxu0 %vm320_vm0, %v204_v36  ;;  %733 = vmatmul.mubr.msk.f32.gmra.mrb[8].mxu1 %vm320_vm0, %v212_v37 }
  0x36   : > { %463 = vmatprep.mubr.f32.mxu0 %v949_v0  ;;  %511 = vmatprep.mubr.f32.mxu1 %v949_v0 }
  0x39   : > { %726 = vmatmul.mubr.msk.f32.gmra.mrb[10].mxu0 %vm320_vm0, %v205_v40  ;;  %734 = vmatmul.mubr.msk.f32.gmra.mrb[10].mxu1 %vm320_vm0, %v213_v41 }
  0x3a   : > { %469 = vmatprep.mubr.f32.mxu0 %v949_v0  ;;  %517 = vmatprep.mubr.f32.mxu1 %v949_v0 }
  0x3d   : > { %727 = vmatmul.mubr.msk.f32.gmra.mrb[12].mxu0 %vm320_vm0, %v206_v42  ;;  %735 = vmatmul.mubr.msk.f32.gmra.mrb[12].mxu1 %vm320_vm0, %v214_v43 }
  0x3e   : > { %475 = vmatprep.mubr.f32.mxu0 %v949_v0  ;;  %523 = vmatprep.mubr.f32.mxu1 %v949_v0 }
  0x41   : > { %728 = vmatmul.mubr.msk.f32.gmra.mrb[14].mxu0 %vm320_vm0, %v207_v44  ;;  %736 = vmatmul.mubr.msk.f32.gmra.mrb[14].mxu1 %vm320_vm0, %v215_v45 }
  0x90   : > { %v243_v46 = vpop.permute.xlu0 %242  ;;  %v283_v47 = vpop.permute.xlu1 %282 }
  0x94   : > { %v248_v48 = vpop.permute.xlu0 %247  ;;  %v288_v49 = vpop.permute.xlu1 %287 }
  0x98   : > { %v293_v50 = vpop.permute.xlu0 %292  ;;  %v1162_v51 = vpop.permute.xlu1 %297 }
  0x9f   : > { %v1164_v52 = vpop.permute.xlu0 %302  ;;  %v1166_v53 = vpop.permute.xlu1 %307 }
  0xa3   : > { %v1168_v54 = vpop.permute.xlu0 %312  ;;  %v1175_v0 = vpop.permute.xlu1 %317 }
  0xa7   : > { %v253_v12 = vpop.permute.xlu0 %252  ;;  %v258_v25 = vpop.permute.xlu1 %257 }
  0xab   : > { %v263_v37 = vpop.permute.xlu0 %262 }
  0xf8   : > { %v483_v55 = vpop.f32.mrb[0].mxu1  ;;  %v435_v56 = vpop.f32.mrb[0].mxu0 }
  0xf9   : > { %v484_v57 = vadd.f32 %v483_v55, %v283_v47  ;;  %v485_v58 = vpop.f32.mrb[1].mxu1  ;;  %v436_v59 = vadd.f32 %v435_v56, %v243_v46  ;;  %v437_v60 = vpop.f32.mrb[1].mxu0 }
  0xfa   : > { %v486_v61 = vadd.f32 %v485_v58, %v283_v47  ;;  %v438_v62 = vadd.f32 %v437_v60, %v243_v46 }
  0xfb   : > { %v570_v63 = vmul.f32 1.442695, %v484_v57  ;;  %v737_v1 = vmul.f32 -1.442695, %v436_v59  ;;  %v268_v57 = vpop.permute.xlu1 %267 }
  0xfc   : > { %v572_v2 = vmul.f32 1.442695, %v486_v61  ;;  %v489_v3 = vpop.f32.mrb[2].mxu1  ;;  %v738_v4 = vmul.f32 -1.442695, %v438_v62  ;;  %v441_v5 = vpop.f32.mrb[2].mxu0 }
  0xfd   : > { %821 = vpow2.f32 %v570_v63  ;;  %v490_v6 = vadd.f32 %v489_v3, %v288_v49  ;;  %v491_v7 = vpop.f32.mrb[3].mxu1  ;;  %v442_v8 = vadd.f32 %v441_v5, %v248_v48  ;;  %v443_v9 = vpop.f32.mrb[3].mxu0 }
  0xfe   : > { %823 = vpow2.f32 %v572_v2  ;;  %v492_v10 = vadd.f32 %v491_v7, %v288_v49  ;;  %v444_v11 = vadd.f32 %v443_v9, %v248_v48 }
  0xff   : > { %v574_v13 = vmul.f32 1.442695, %v490_v6  ;;  %825 = vpow2.f32 %v737_v1  ;;  %v739_v14 = vmul.f32 -1.442695, %v442_v8 }
 0x100   : > { %v576_v15 = vmul.f32 1.442695, %v492_v10  ;;  %827 = vpow2.f32 %v738_v4  ;;  %v495_v16 = vpop.f32.mrb[4].mxu1  ;;  %v740_v17 = vmul.f32 -1.442695, %v444_v11  ;;  %v447_v18 = vpop.f32.mrb[4].mxu0 }
 0x101   : > { %829 = vpow2.f32 %v574_v13  ;;  %v496_v19 = vadd.f32 %v495_v16, %v293_v50  ;;  %v497_v20 = vpop.f32.mrb[5].mxu1  ;;  %v448_v21 = vadd.f32 %v447_v18, %v253_v12  ;;  %v449_v22 = vpop.f32.mrb[5].mxu0 }
 0x102   : > { %831 = vpow2.f32 %v576_v15  ;;  %v498_v23 = vadd.f32 %v497_v20, %v293_v50  ;;  %v450_v24 = vadd.f32 %v449_v22, %v253_v12  ;;  %v273_v10 = vpop.permute.xlu0 %272  ;;  %v278_v22 = vpop.permute.xlu1 %277 }
 0x103   : > { %833 = vpow2.f32 %v739_v14  ;;  %v578_v26 = vmul.f32 1.442695, %v496_v19  ;;  %558 = vst [vmem:[%s1178_s29 + $0x20] sm:$0xff] %v448_v21 }
 0x104   : > { %835 = vpow2.f32 %v740_v17  ;;  %v580_v27 = vmul.f32 1.442695, %v498_v23  ;;  %559 = vst [vmem:[%s1178_s29 + $0x28] sm:$0xff] %v450_v24  ;;  %v453_v28 = vpop.f32.mrb[6].mxu0  ;;  %v501_v29 = vpop.f32.mrb[6].mxu1 }
 0x105   : > { %837 = vpow2.f32 %v578_v26  ;;  %v454_v30 = vadd.f32 %v453_v28, %v258_v25  ;;  %v502_v31 = vadd.f32 %v501_v29, %v1162_v51  ;;  %v455_v32 = vpop.f32.mrb[7].mxu0  ;;  %v503_v33 = vpop.f32.mrb[7].mxu1 }
 0x106   : > { %839 = vpow2.f32 %v580_v27  ;;  %v456_v34 = vadd.f32 %v455_v32, %v258_v25  ;;  %v504_v35 = vadd.f32 %v503_v33, %v1162_v51 }
 0x107   : > { %v822_v36 = vpop.eup %821  ;;  %560 = vst [vmem:[%s1178_s29 + $0x30] sm:$0xff] %v454_v30  ;;  %v582_v38 = vmul.f32 1.442695, %v502_v31 }
 0x108   : > { %v824_v39 = vpop.eup %823  ;;  %602 = vst [vmem:[%s1178_s29 + $0x80] sm:$0xff] %v822_v36  ;;  %561 = vst [vmem:[%s1178_s29 + $0x38] sm:$0xff] %v456_v34  ;;  %v584_v40 = vmul.f32 1.442695, %v504_v35  ;;  %v459_v41 = vpop.f32.mrb[8].mxu0 }
 0x109   : > { %v507_v42 = vpop.f32.mrb[8].mxu1  ;;  %v826_v43 = vpop.eup %825  ;;  %603 = vst [vmem:[%s1178_s29 + $0x88] sm:$0xff] %v824_v39  ;;  %841 = vpow2.f32 %v582_v38  ;;  %v460_v44 = vadd.f32 %v459_v41, %v263_v37 }
 0x10a   : > { %v508_v45 = vadd.f32 %v507_v42, %v1164_v52  ;;  %v461_v46 = vpop.f32.mrb[9].mxu0  ;;  %v509_v47 = vpop.f32.mrb[9].mxu1  ;;  %v542_v49 = vadd.f32 1.0, %v826_v43  ;;  %843 = vpow2.f32 %v584_v40 }
 0x10b   : > { %v828_v48 = vpop.eup %827  ;;  %v462_v50 = vadd.f32 %v461_v46, %v263_v37  ;;  %v510_v51 = vadd.f32 %v509_v47, %v1164_v52  ;;  %562 = vst [vmem:[%s1178_s29 + $0x40] sm:$0xff] %v460_v44 }
 0x10c   : > { %v830_v55 = vpop.eup %829  ;;  %v543_v56 = vadd.f32 1.0, %v828_v48  ;;  %v586_v58 = vmul.f32 1.442695, %v508_v45  ;;  %845 = vrcp.f32 %v542_v49  ;;  %v465_v61 = vpop.f32.mrb[10].mxu0 }
 0x10d   : > { %v832_v59 = vpop.eup %831  ;;  %604 = vst [vmem:[%s1178_s29 + $0x90] sm:$0xff] %v830_v55  ;;  %563 = vst [vmem:[%s1178_s29 + $0x48] sm:$0xff] %v462_v50  ;;  %v588_v60 = vmul.f32 1.442695, %v510_v51  ;;  %v513_v62 = vpop.f32.mrb[10].mxu1  ;;  %v466_v1 = vadd.f32 %v465_v61, %v268_v57 }
 0x10e   : > { %v834_v63 = vpop.eup %833  ;;  %605 = vst [vmem:[%s1178_s29 + $0x98] sm:$0xff] %v832_v59  ;;  %847 = vrcp.f32 %v543_v56  ;;  %v514_v2 = vadd.f32 %v513_v62, %v1166_v53  ;;  %v467_v52 = vpop.f32.mrb[11].mxu0 }
 0x10f   : > { %v515_v3 = vpop.f32.mrb[11].mxu1  ;;  %v836_v4 = vpop.eup %835  ;;  %v544_v5 = vadd.f32 1.0, %v834_v63  ;;  %849 = vpow2.f32 %v586_v58  ;;  %v468_v6 = vadd.f32 %v467_v52, %v268_v57  ;;  %564 = vst [vmem:[%s1178_s29 + $0x50] sm:$0xff] %v466_v1 }
 0x110   : > { %v516_v7 = vadd.f32 %v515_v3, %v1166_v53  ;;  %v838_v8 = vpop.eup %837  ;;  %v545_v9 = vadd.f32 1.0, %v836_v4  ;;  %851 = vpow2.f32 %v588_v60  ;;  %v590_v11 = vmul.f32 1.442695, %v514_v2  ;;  %v471_v14 = vpop.f32.mrb[12].mxu0 }
 0x111   : > { %v840_v12 = vpop.eup %839  ;;  %853 = vrcp.f32 %v544_v5  ;;  %606 = vst [vmem:[%s1178_s29 + $0xa0] sm:$0xff] %v838_v8  ;;  %565 = vst [vmem:[%s1178_s29 + $0x58] sm:$0xff] %v468_v6  ;;  %v519_v15 = vpop.f32.mrb[12].mxu1  ;;  %v472_v16 = vadd.f32 %v471_v14, %v273_v10 }
 0x112   : > { %v592_v13 = vmul.f32 1.442695, %v516_v7  ;;  %855 = vrcp.f32 %v545_v9  ;;  %607 = vst [vmem:[%s1178_s29 + $0xa8] sm:$0xff] %v840_v12  ;;  %v520_v53 = vadd.f32 %v519_v15, %v1168_v54  ;;  %v473_v17 = vpop.f32.mrb[13].mxu0  ;;  %v521_v18 = vpop.f32.mrb[13].mxu1 }
 0x113   : > { %857 = vpow2.f32 %v590_v11  ;;  %v474_v19 = vadd.f32 %v473_v17, %v273_v10  ;;  %v522_v20 = vadd.f32 %v521_v18, %v1168_v54  ;;  %v842_v21 = vpop.eup %841  ;;  %566 = vst [vmem:[%s1178_s29 + $0x60] sm:$0xff] %v472_v16 }
 0x114   : > { %859 = vpow2.f32 %v592_v13  ;;  %v594_v23 = vmul.f32 1.442695, %v520_v53  ;;  %v844_v24 = vpop.eup %843  ;;  %608 = vst [vmem:[%s1178_s29 + $0xb0] sm:$0xff] %v842_v21  ;;  %v477_v26 = vpop.f32.mrb[14].mxu0 }
 0x115   : > { %567 = vst [vmem:[%s1178_s29 + $0x68] sm:$0xff] %v474_v19  ;;  %v596_v25 = vmul.f32 1.442695, %v522_v20  ;;  %v525_v27 = vpop.f32.mrb[14].mxu1  ;;  %609 = vst [vmem:[%s1178_s29 + $0xb8] sm:$0xff] %v844_v24  ;;  %v478_v28 = vadd.f32 %v477_v26, %v278_v22  ;;  %v479_v29 = vpop.f32.mrb[15].mxu0 }
 0x116   : > { %861 = vpow2.f32 %v594_v23  ;;  %v526_v54 = vadd.f32 %v525_v27, %v1175_v0  ;;  %v527_v30 = vpop.f32.mrb[15].mxu1  ;;  %v846_v31 = vpop.eup %845  ;;  %v480_v32 = vadd.f32 %v479_v29, %v278_v22 }
 0x117   : > { %863 = vpow2.f32 %v596_v25  ;;  %v528_v33 = vadd.f32 %v527_v30, %v1175_v0  ;;  %554 = vst [vmem:[%s1178_s29] sm:$0xff] %v846_v31  ;;  %568 = vst [vmem:[%s1178_s29 + $0x70] sm:$0xff] %v478_v28 }
 0x118   : > { %v848_v34 = vpop.eup %847  ;;  %v598_v35 = vmul.f32 1.442695, %v526_v54  ;;  %569 = vst [vmem:[%s1178_s29 + $0x78] sm:$0xff] %v480_v32 }
 0x119   : > { %v850_v36 = vpop.eup %849  ;;  %555 = vst [vmem:[%s1178_s29 + $0x8] sm:$0xff] %v848_v34  ;;  %v600_v37 = vmul.f32 1.442695, %v528_v33 }
 0x11a   : > { %v852_v38 = vpop.eup %851  ;;  %610 = vst [vmem:[%s1178_s29 + $0xc0] sm:$0xff] %v850_v36  ;;  %865 = vpow2.f32 %v598_v35 }
 0x11b   : > { %v854_v0 = vpop.eup %853  ;;  %611 = vst [vmem:[%s1178_s29 + $0xc8] sm:$0xff] %v852_v38  ;;  %867 = vpow2.f32 %v600_v37 }
 0x11c   : > { %v856_v39 = vpop.eup %855  ;;  %556 = vst [vmem:[%s1178_s29 + $0x10] sm:$0xff] %v854_v0 }
 0x11d   : > { %v858_v40 = vpop.eup %857  ;;  %557 = vst [vmem:[%s1178_s29 + $0x18] sm:$0xff] %v856_v39 }
 0x11e   : > { %v860_v41 = vpop.eup %859  ;;  %612 = vst [vmem:[%s1178_s29 + $0xd0] sm:$0xff] %v858_v40 }
 0x11f   : > { %613 = vst [vmem:[%s1178_s29 + $0xd8] sm:$0xff] %v860_v41 }
 0x120   : > { %v862_v42 = vpop.eup %861 }
 0x121   : > { %v864_v43 = vpop.eup %863  ;;  %614 = vst [vmem:[%s1178_s29 + $0xe0] sm:$0xff] %v862_v42 }
 0x122   : > { %615 = vst [vmem:[%s1178_s29 + $0xe8] sm:$0xff] %v864_v43 }
 0x124   : > { %v866_v44 = vpop.eup %865 }
 0x125   : > { %v868_v45 = vpop.eup %867  ;;  %616 = vst [vmem:[%s1178_s29 + $0xf0] sm:$0xff] %v866_v44 }
 0x126   : > { %617 = vst [vmem:[%s1178_s29 + $0xf8] sm:$0xff] %v868_v45 }
 0x127   : > { %882 = shalt.err (!%p879_p5)
}
 0x128   : > { %s883_s18 = scalar_lea.hbm %s1225_s7, 4096  ;;  %s887_s23 = scalar_lea.hbm %s1282_s3, 8192 }
 0x129   : > { %p884_p6 = scmp.ne.s32.totalorder %s1225_s7, %s883_s18  ;;  %p888_p10 = scmp.lt.u32.totalorder %s1225_s7, %s1282_s3 }
 0x12a   : > { %p889_p11 = scmp.lt.u32.totalorder %s887_s23, %s883_s18  ;;  %p891_p13 = scmp.lt.u32.totalorder %s883_s18, %s1225_s7 }
 0x12b   : > { %p885_p7 = pnand %p884_p6, %p1014_p4 }
 0x12c   : > { %p890_p12 = por %p889_p11, %p888_p10 }
 0x12d   : > { %p886_p9 = pneg %p885_p7 }
 0x12e   : > { %p892_p0 = por %p891_p13, %p890_p12 }
 0x130   : > { %p893_p1 = pnand %p892_p0, %p886_p9 }
 0x132   : > { %896 = shalt.err (!%p893_p1)
}
 0x133   : > { %s952_s28 = smov 256   ;;  %s953_s29 = smov 16  }
 0x134   : > { %760 = dma.vmem_to_hbm [thread:$0]  (%p1014_p4), %s1227_s4, 4096, %s1225_s7, %s1233_s15, %s952_s28, %s952_s28, %s953_s29  }
 0x135 PF: > { %p766_p2 = scmp.ge.s32.totalorder %s947_s17, 2  ;;  %s649_s30 = sand.u32 1, %s927_s12  }
 0x136   : > { %s650_s5 = scalar_lea.sflag [#allocation3], %s649_s30 }
 0x137   : > { %p763_p3 = pnand %p766_p2, %p1021_p8 }
 0x139   : > { %922 = dma.done.wait (!%p763_p3), %s650_s5, 4096  }
 0x13a   : > { %924 = vsyncadd (!%p763_p3), %s650_s5, 4294963200  ;;  %s16_s17 = sadd.s32 1, %s947_s17   ;;  %s1285_s12 = smov %s931_s13 }
 0x13b   : > { %p13_p5 = scmp.ge.s32.totalorder %s16_s17, 4   ;;  %s1286_s13 = smov %s935_s14 }
 0x13c   : > { %s1287_s14 = smov %s1027_s25  ;;  %s1288_s15 = smov %s943_s16 }
 0x13d   : > { %s1289_s16 = smov %s1291_s20  ;;  %15 = sbr.rel (!%p13_p5) target bundleno = 4 (0x4), region = 67 }
 0x144   :  { %655 = vsyncpa [#allocation3], 1 }
 0x145   :  { %657 = vsyncpa [#allocation3 + $0x1], 1 }

</bundles_post_ra>
